<compile_context>
chip_gen: v5e
topology: v5e:2x2
jax: 0.10.0
libtpu: 0.0.40
codegen_flags: <defaults>
</compile_context>

<pallas_src>
import functools

import jax
import jax.numpy as jnp
import numpy as np
from jax.experimental import pallas as pl
from jax.experimental.pallas import tpu as pltpu

# ---------------------------------------------------------------------------
# Static "config" (CegisConfig)
# ---------------------------------------------------------------------------
N_OBS = 4
B_HIDDEN = (16, 16, 16)
B_ACT = ("SQUARE", "SKIP", "MUL")
BM_VALUE = 0.5          # config.bm  (bm_hidden is empty -> constant parameter)
BATCH = 16


# ---------------------------------------------------------------------------
# Kernel: one invocation processes the whole stacked batch.
#   x_ref : (4T, HP)        rows = [I ; l1 ; U ; l1_dot]   (features zero-padded)
#   w_ref : (L, 2HP, 2HP)   per layer: [[w1, 0], [0, w2]] (w2 block only SKIP/MUL)
#   b_ref : (L+1, 2HP)      per layer: [b1 | b2]; last row: [w_last | 0]
#   o_ref : (4T, 1)         contraction of every row with w_last
#   y_ref : (4T, HP)        persistent VMEM activation scratch
# ---------------------------------------------------------------------------
def _net_kernel(acts, T, HP, x_ref, w_ref, b_ref, o_ref, y_ref):
    L = len(acts)
    x = x_ref[...]                       # (4T, HP)
    W = w_ref[...]                       # (L, 2HP, 2HP)
    B = b_ref[...]                       # (L+1, 2HP)
    w_last = B[L:L + 1, :HP]             # (1, HP)

    def mm(a, b):
        return jnp.dot(a, b, preferred_element_type=jnp.float32)

    y = x                                # layer-0 input comes straight from x
    for k, act in enumerate(acts):
        if k > 0:
            y = y_ref[...]
        b1 = B[k:k + 1, :HP]             # (1, HP)
        b2 = B[k:k + 1, HP:]             # (1, HP)

        if act == "SQUARE":
            z = mm(y, W[k, :HP, :HP])                    # (4T, HP)
            zp = z[:3 * T] + b1                          # biased primal rows
            zt = z[3 * T:]                               # unbiased tangent rows
            prim = zp * zp                               # z**2
            tang = 2.0 * zp[T:2 * T] * zt                # 2*z*zdot (l1 block)
        elif act in ("SKIP", "MUL"):
            src2 = x if act == "SKIP" else y
            yy = jnp.concatenate([y, src2], axis=1)      # (4T, 2HP)
            z = mm(yy, W[k])                             # one block-diag matmul
            z1p = z[:3 * T, :HP] + b1
            z2p = z[:3 * T, HP:] + b2
            z1t = z[3 * T:, :HP]
            z2t = z[3 * T:, HP:]
            prim = z1p * z2p                             # z1*z2
            # z1*z2dot + z2*z1dot (primal factors from the l1 block)
            tang = z1p[T:2 * T] * z2t + z2p[T:2 * T] * z1t
        elif act == "LINEAR":
            z = mm(y, W[k, :HP, :HP])
            prim = z[:3 * T] + b1
            tang = z[3 * T:]
        else:
            raise ValueError(f"unknown activation {act}")

        y_ref[:3 * T, :] = prim
        y_ref[3 * T:, :] = tang

    # Final contraction with w_last: VPU broadcast-multiply + lane reduce
    # (avoids a 1-lane MXU matmul); single store of the packed result.
    y = y_ref[...]
    o_ref[...] = jnp.sum(y * w_last, axis=-1, keepdims=True)   # (4T, 1)


# ---------------------------------------------------------------------------
# Parameter init (deterministic, nn.Linear-style uniform bounds)
# ---------------------------------------------------------------------------
def init_params(key, n_obs, hidden, acts):
    params = []
    n_prev = n_obs
    keys = jax.random.split(key, 4 * len(hidden) + 1)
    ki = 0
    for n_hid, act in zip(hidden, acts):
        in2 = n_obs if act == "SKIP" else n_prev
        bnd1 = 1.0 / float(np.sqrt(n_prev))
        bnd2 = 1.0 / float(np.sqrt(in2))
        w1 = jax.random.uniform(keys[ki], (n_prev, n_hid), jnp.float32, -bnd1, bnd1); ki += 1
        b1 = jax.random.uniform(keys[ki], (1, n_hid), jnp.float32, -bnd1, bnd1); ki += 1
        w2 = jax.random.uniform(keys[ki], (in2, n_hid), jnp.float32, -bnd2, bnd2); ki += 1
        b2 = jax.random.uniform(keys[ki], (1, n_hid), jnp.float32, -bnd2, bnd2); ki += 1
        params += [w1, b1, w2, b2]
        n_prev = n_hid
    bnd = 1.0 / float(np.sqrt(n_prev))
    w_last = jax.random.uniform(keys[ki], (n_prev, 1), jnp.float32, -bnd, bnd)
    params.append(w_last)
    return params


# ---------------------------------------------------------------------------
# One-time slab packing (per parameter update, NOT per forward call)
# ---------------------------------------------------------------------------
def pack_params(params, acts, n_obs):
    """Returns (w_slab (L, 2HP, 2HP), b_slab (L+1, 2HP)) with zero padding.

    w_slab[k] = [[w1, 0], [0, w2]]   (w2 block only for SKIP/MUL layers)
    b_slab[k] = [b1 | b2];  b_slab[L] = [w_last_row | 0]
    """
    L = len(acts)
    HP = n_obs
    for k in range(L):
        HP = max(HP, params[4 * k].shape[1])
    HP = int(-(-HP // 8) * 8)

    w_blocks, b_rows = [], []
    for k in range(L):
        w1, b1, w2, b2 = params[4 * k:4 * k + 4]
        wk = jnp.zeros((2 * HP, 2 * HP), jnp.float32)
        wk = wk.at[:w1.shape[0], :w1.shape[1]].set(w1)
        if acts[k] in ("SKIP", "MUL"):
            wk = wk.at[HP:HP + w2.shape[0], HP:HP + w2.shape[1]].set(w2)
        w_blocks.append(wk)
        bk = jnp.zeros((2 * HP,), jnp.float32)
        bk = bk.at[:b1.shape[1]].set(b1[0])
        bk = bk.at[HP:HP + b2.shape[1]].set(b2[0])
        b_rows.append(bk)
    w_last = params[4 * L]                                     # (n_prev, 1)
    blast = jnp.zeros((2 * HP,), jnp.float32)
    blast = blast.at[:w_last.shape[0]].set(w_last[:, 0])
    b_rows.append(blast)
    return jnp.stack(w_blocks), jnp.stack(b_rows)


# ---------------------------------------------------------------------------
# Jitted forward wrapper (takes pre-packed slabs)
# ---------------------------------------------------------------------------
@functools.partial(jax.jit, static_argnames=("acts",))
def net_forward(l1, I, U, l1_dot, w_slab, b_slab, bm_value, acts):
    n, d = l1.shape
    assert n % 8 == 0, "batch must be a multiple of 8 (sublane alignment)"
    L = w_slab.shape[0]
    HP = b_slab.shape[1] // 2

    # Stack data rows [I ; l1 ; U ; l1_dot] and zero-pad features (padded
    # weight rows are zero, so padded activation columns never contribute).
    x_stack = jnp.concatenate([I, l1, U, l1_dot], axis=0)
    x_stack = jnp.pad(x_stack, ((0, 0), (0, HP - d)))          # (4n, HP)

    kernel = functools.partial(_net_kernel, tuple(acts), n, HP)
    contr = pl.pallas_call(
        kernel,
        out_shape=jax.ShapeDtypeStruct((4 * n, 1), jnp.float32),
        grid=(1,),
        in_specs=[
            pl.BlockSpec((4 * n, HP), lambda i: (0, 0)),
            pl.BlockSpec((L, 2 * HP, 2 * HP), lambda i: (0, 0, 0)),
            pl.BlockSpec((L + 1, 2 * HP), lambda i: (0, 0)),
        ],
        out_specs=pl.BlockSpec((4 * n, 1), lambda i: (0, 0)),
        scratch_shapes=[pltpu.VMEM((4 * n, HP), jnp.float32)],
        compiler_params=pltpu.CompilerParams(
            dimension_semantics=("arbitrary",)),
    )(x_stack, w_slab, b_slab)

    b1_y = contr[0:n]                  # input I
    bl_1 = contr[n:2 * n]              # input l1 (primal of the JVP stack)
    b2_y = contr[2 * n:3 * n]          # input U
    b1_grad = contr[3 * n:, 0]         # JVP tangent, contracted -> (n,)
    # bm_hidden == [] branch: constant barrier multiplier (same `l1*0 + bm`
    # semantics as PyTorch, NaN propagation preserved; no kernel work needed).
    bm1_y = l1 * 0.0 + bm_value
    return b1_y, bl_1, b1_grad, bm1_y, b2_y


# ---------------------------------------------------------------------------
# Pure-JAX reference (mirrors the PyTorch code, incl. explicit Jacobian chain)
# ---------------------------------------------------------------------------
def _ref_net_out(x, params, acts, n_layers):
    y = x
    for k in range(n_layers):
        w1, b1, w2, b2 = params[4 * k:4 * k + 4]
        if acts[k] == "SQUARE":
            y = (y @ w1 + b1) ** 2
        elif acts[k] == "SKIP":
            y = (y @ w1 + b1) * (x @ w2 + b2)
        elif acts[k] == "MUL":
            y = (y @ w1 + b1) * (y @ w2 + b2)
        elif acts[k] == "LINEAR":
            y = y @ w1 + b1
    return y @ params[4 * n_layers]


def _ref_grad(x, xdot, params, acts, n_layers):
    n, d = x.shape
    y = x
    jac = jnp.broadcast_to(jnp.eye(d, dtype=x.dtype), (n, d, d))
    for k in range(n_layers):
        w1, b1, w2, b2 = params[4 * k:4 * k + 4]
        w1t, w2t = w1.T, w2.T                      # torch layout (out, in)
        if acts[k] == "SQUARE":
            z = y @ w1 + b1
            y = z ** 2
            jac = jnp.matmul((2.0 * z)[:, :, None] * w1t, jac)
        elif acts[k] == "SKIP":
            z1 = y @ w1 + b1
            z2 = x @ w2 + b2
            y = z1 * z2
            jac = z1[:, :, None] * w2t + jnp.matmul(z2[:, :, None] * w1t, jac)
        elif acts[k] == "MUL":
            z1 = y @ w1 + b1
            z2 = y @ w2 + b2
            y = z1 * z2
            grad = z1[:, :, None] * w2t + z2[:, :, None] * w1t
            jac = jnp.matmul(grad, jac)
        elif acts[k] == "LINEAR":
            y = y @ w1 + b1
            jac = jnp.matmul(w1t, jac)
    jac = jnp.matmul(params[4 * n_layers].T, jac)  # (N, 1, d)
    return jnp.sum(jac[:, 0, :] * xdot, axis=1)


# ---------------------------------------------------------------------------
if __name__ == "__main__":
    key = jax.random.PRNGKey(0)
    k_data, k_param = jax.random.split(key)
    kl1, ki, ku, kd = jax.random.split(k_data, 4)

    l1 = jax.random.normal(kl1, (BATCH, N_OBS), jnp.float32)
    I = jax.random.normal(ki, (BATCH, N_OBS), jnp.float32)
    U = jax.random.normal(ku, (BATCH, N_OBS), jnp.float32)
    l1_dot = jax.random.normal(kd, (BATCH, N_OBS), jnp.float32)

    params = init_params(k_param, N_OBS, B_HIDDEN, B_ACT)

    # Pack weight/bias slabs ONCE (per parameter update, not per call).
    w_slab, b_slab = pack_params(params, B_ACT, N_OBS)
    w_slab, b_slab = jax.block_until_ready((w_slab, b_slab))

    outs = net_forward(l1, I, U, l1_dot, w_slab, b_slab, BM_VALUE, B_ACT)
    outs = jax.block_until_ready(outs)
    b1_y, bl_1, b1_grad, bm1_y, b2_y = outs

    # Reference check (pure JAX, mirrors PyTorch semantics exactly).
    n_layers = len(B_ACT)
    ref_b1_y = _ref_net_out(I, params, B_ACT, n_layers)
    ref_bl_1 = _ref_net_out(l1, params, B_ACT, n_layers)
    ref_grad = _ref_grad(l1, l1_dot, params, B_ACT, n_layers)
    ref_bm1_y = l1 * 0.0 + BM_VALUE
    ref_b2_y = _ref_net_out(U, params, B_ACT, n_layers)

    np.testing.assert_allclose(np.asarray(b1_y), np.asarray(ref_b1_y), rtol=1e-4, atol=1e-4)
    np.testing.assert_allclose(np.asarray(bl_1), np.asarray(ref_bl_1), rtol=1e-4, atol=1e-4)
    np.testing.assert_allclose(np.asarray(b1_grad), np.asarray(ref_grad), rtol=1e-4, atol=1e-4)
    np.testing.assert_allclose(np.asarray(bm1_y), np.asarray(ref_bm1_y), rtol=1e-4, atol=1e-4)
    np.testing.assert_allclose(np.asarray(b2_y), np.asarray(ref_b2_y), rtol=1e-4, atol=1e-4)

    print("KERNEL_OK")
</pallas_src>

<mosaic_0001>
module attributes {stable_mosaic.version = 11 : i64} {
  func.func @_net_kernel(%arg0: i32, %arg1: memref<64x16xf32, #tpu.memory_space<vmem>>, %arg2: memref<3x32x32xf32, #tpu.memory_space<vmem>>, %arg3: memref<4x32xf32, #tpu.memory_space<vmem>>, %arg4: memref<64x1xf32, #tpu.memory_space<vmem>>, %arg5: memref<64x16xf32, #tpu.memory_space<vmem>>) attributes {dimension_semantics = [#tpu.dimension_semantics<arbitrary>], iteration_bounds = array<i64: 1>, scalar_prefetch = 0 : i64, scratch_operands = 1 : i64, tpu.core_type = #tpu.core_type<tc>, window_params = [{pipeline_mode = #tpu.pipeline_mode<synchronous>, transform_indices = @transform_0, window_bounds = array<i64: 64, 16>}, {pipeline_mode = #tpu.pipeline_mode<synchronous>, transform_indices = @transform_1, window_bounds = array<i64: 3, 32, 32>}, {pipeline_mode = #tpu.pipeline_mode<synchronous>, transform_indices = @transform_2, window_bounds = array<i64: 4, 32>}, {pipeline_mode = #tpu.pipeline_mode<synchronous>, transform_indices = @transform_3, window_bounds = array<i64: 64, 1>}]} {
    %c0 = arith.constant 0 : index
    %c0_0 = arith.constant 0 : index
    %0 = vector.load %arg1[%c0, %c0_0] : memref<64x16xf32, #tpu.memory_space<vmem>>, vector<64x16xf32>
    %c0_1 = arith.constant 0 : index
    %c0_2 = arith.constant 0 : index
    %c0_3 = arith.constant 0 : index
    %1 = vector.load %arg2[%c0_1, %c0_2, %c0_3] : memref<3x32x32xf32, #tpu.memory_space<vmem>>, vector<3x32x32xf32>
    %c0_4 = arith.constant 0 : index
    %c0_5 = arith.constant 0 : index
    %2 = vector.load %arg3[%c0_4, %c0_5] : memref<4x32xf32, #tpu.memory_space<vmem>>, vector<4x32xf32>
    %3 = vector.extract_strided_slice %2 {offsets = [3, 0], sizes = [1, 16], strides = [1, 1]} : vector<4x32xf32> to vector<1x16xf32>
    %4 = vector.extract_strided_slice %2 {offsets = [0, 0], sizes = [1, 16], strides = [1, 1]} : vector<4x32xf32> to vector<1x16xf32>
    %5 = vector.extract_strided_slice %1 {offsets = [0, 0, 0], sizes = [1, 16, 16], strides = [1, 1, 1]} : vector<3x32x32xf32> to vector<1x16x16xf32>
    %6 = vector.shape_cast %5 : vector<1x16x16xf32> to vector<16x16xf32>
    %cst = arith.constant dense<0.000000e+00> : vector<64x16xf32>
    %7 = tpu.matmul %0, %6, %cst {dimension_numbers = #tpu.dot_dimension_numbers<[1], [0], [0], [1], [0, 0, 1, 1], [], []>} : vector<64x16xf32>, vector<16x16xf32>, vector<64x16xf32> -> vector<64x16xf32>
    %8 = vector.extract_strided_slice %7 {offsets = [0, 0], sizes = [48, 16], strides = [1, 1]} : vector<64x16xf32> to vector<48x16xf32>
    %9 = vector.broadcast %4 : vector<1x16xf32> to vector<48x16xf32>
    %10 = arith.addf %8, %9 : vector<48x16xf32>
    %11 = vector.extract_strided_slice %7 {offsets = [48, 0], sizes = [16, 16], strides = [1, 1]} : vector<64x16xf32> to vector<16x16xf32>
    %12 = arith.mulf %10, %10 : vector<48x16xf32>
    %13 = vector.extract_strided_slice %10 {offsets = [16, 0], sizes = [16, 16], strides = [1, 1]} : vector<48x16xf32> to vector<16x16xf32>
    %cst_6 = arith.constant 2.000000e+00 : f32
    %14 = vector.broadcast %cst_6 : f32 to vector<16x16xf32>
    %15 = arith.mulf %14, %13 : vector<16x16xf32>
    %16 = arith.mulf %15, %11 : vector<16x16xf32>
    %c0_7 = arith.constant 0 : index
    %c0_8 = arith.constant 0 : index
    %17 = vector.load %arg5[%c0_7, %c0_8] : memref<64x16xf32, #tpu.memory_space<vmem>>, vector<48x16xf32>
    tpu.vector_store %arg5[%c0_7, %c0_8], %12 {strides = array<i32>} : memref<64x16xf32, #tpu.memory_space<vmem>>, vector<48x16xf32>,
    %c48 = arith.constant 48 : index
    %c0_9 = arith.constant 0 : index
    %18 = vector.load %arg5[%c48, %c0_9] : memref<64x16xf32, #tpu.memory_space<vmem>>, vector<16x16xf32>
    tpu.vector_store %arg5[%c48, %c0_9], %16 {strides = array<i32>} : memref<64x16xf32, #tpu.memory_space<vmem>>, vector<16x16xf32>,
    %c0_10 = arith.constant 0 : index
    %c0_11 = arith.constant 0 : index
    %19 = vector.load %arg5[%c0_10, %c0_11] : memref<64x16xf32, #tpu.memory_space<vmem>>, vector<64x16xf32>
    %20 = vector.extract_strided_slice %2 {offsets = [1, 0], sizes = [1, 16], strides = [1, 1]} : vector<4x32xf32> to vector<1x16xf32>
    %21 = vector.extract_strided_slice %2 {offsets = [1, 16], sizes = [1, 16], strides = [1, 1]} : vector<4x32xf32> to vector<1x16xf32>
    %22 = tpu.concatenate %19, %0 in 1 : vector<64x16xf32>, vector<64x16xf32> -> vector<64x32xf32>
    %23 = vector.extract_strided_slice %1 {offsets = [1, 0, 0], sizes = [1, 32, 32], strides = [1, 1, 1]} : vector<3x32x32xf32> to vector<1x32x32xf32>
    %24 = vector.shape_cast %23 : vector<1x32x32xf32> to vector<32x32xf32>
    %cst_12 = arith.constant dense<0.000000e+00> : vector<64x32xf32>
    %25 = tpu.matmul %22, %24, %cst_12 {dimension_numbers = #tpu.dot_dimension_numbers<[1], [0], [0], [1], [0, 0, 1, 1], [], []>} : vector<64x32xf32>, vector<32x32xf32>, vector<64x32xf32> -> vector<64x32xf32>
    %26 = vector.extract_strided_slice %25 {offsets = [0, 0], sizes = [48, 16], strides = [1, 1]} : vector<64x32xf32> to vector<48x16xf32>
    %27 = vector.broadcast %20 : vector<1x16xf32> to vector<48x16xf32>
    %28 = arith.addf %26, %27 : vector<48x16xf32>
    %29 = vector.extract_strided_slice %25 {offsets = [0, 16], sizes = [48, 16], strides = [1, 1]} : vector<64x32xf32> to vector<48x16xf32>
    %30 = vector.broadcast %21 : vector<1x16xf32> to vector<48x16xf32>
    %31 = arith.addf %29, %30 : vector<48x16xf32>
    %32 = vector.extract_strided_slice %25 {offsets = [48, 0], sizes = [16, 16], strides = [1, 1]} : vector<64x32xf32> to vector<16x16xf32>
    %33 = vector.extract_strided_slice %25 {offsets = [48, 16], sizes = [16, 16], strides = [1, 1]} : vector<64x32xf32> to vector<16x16xf32>
    %34 = arith.mulf %28, %31 : vector<48x16xf32>
    %35 = vector.extract_strided_slice %28 {offsets = [16, 0], sizes = [16, 16], strides = [1, 1]} : vector<48x16xf32> to vector<16x16xf32>
    %36 = arith.mulf %35, %33 : vector<16x16xf32>
    %37 = vector.extract_strided_slice %31 {offsets = [16, 0], sizes = [16, 16], strides = [1, 1]} : vector<48x16xf32> to vector<16x16xf32>
    %38 = arith.mulf %37, %32 : vector<16x16xf32>
    %39 = arith.addf %36, %38 : vector<16x16xf32>
    %c0_13 = arith.constant 0 : index
    %c0_14 = arith.constant 0 : index
    %40 = vector.load %arg5[%c0_13, %c0_14] : memref<64x16xf32, #tpu.memory_space<vmem>>, vector<48x16xf32>
    tpu.vector_store %arg5[%c0_13, %c0_14], %34 {strides = array<i32>} : memref<64x16xf32, #tpu.memory_space<vmem>>, vector<48x16xf32>,
    %c48_15 = arith.constant 48 : index
    %c0_16 = arith.constant 0 : index
    %41 = vector.load %arg5[%c48_15, %c0_16] : memref<64x16xf32, #tpu.memory_space<vmem>>, vector<16x16xf32>
    tpu.vector_store %arg5[%c48_15, %c0_16], %39 {strides = array<i32>} : memref<64x16xf32, #tpu.memory_space<vmem>>, vector<16x16xf32>,
    %c0_17 = arith.constant 0 : index
    %c0_18 = arith.constant 0 : index
    %42 = vector.load %arg5[%c0_17, %c0_18] : memref<64x16xf32, #tpu.memory_space<vmem>>, vector<64x16xf32>
    %43 = vector.extract_strided_slice %2 {offsets = [2, 0], sizes = [1, 16], strides = [1, 1]} : vector<4x32xf32> to vector<1x16xf32>
    %44 = vector.extract_strided_slice %2 {offsets = [2, 16], sizes = [1, 16], strides = [1, 1]} : vector<4x32xf32> to vector<1x16xf32>
    %45 = tpu.concatenate %42, %42 in 1 : vector<64x16xf32>, vector<64x16xf32> -> vector<64x32xf32>
    %46 = vector.extract_strided_slice %1 {offsets = [2, 0, 0], sizes = [1, 32, 32], strides = [1, 1, 1]} : vector<3x32x32xf32> to vector<1x32x32xf32>
    %47 = vector.shape_cast %46 : vector<1x32x32xf32> to vector<32x32xf32>
    %cst_19 = arith.constant dense<0.000000e+00> : vector<64x32xf32>
    %48 = tpu.matmul %45, %47, %cst_19 {dimension_numbers = #tpu.dot_dimension_numbers<[1], [0], [0], [1], [0, 0, 1, 1], [], []>} : vector<64x32xf32>, vector<32x32xf32>, vector<64x32xf32> -> vector<64x32xf32>
    %49 = vector.extract_strided_slice %48 {offsets = [0, 0], sizes = [48, 16], strides = [1, 1]} : vector<64x32xf32> to vector<48x16xf32>
    %50 = vector.broadcast %43 : vector<1x16xf32> to vector<48x16xf32>
    %51 = arith.addf %49, %50 : vector<48x16xf32>
    %52 = vector.extract_strided_slice %48 {offsets = [0, 16], sizes = [48, 16], strides = [1, 1]} : vector<64x32xf32> to vector<48x16xf32>
    %53 = vector.broadcast %44 : vector<1x16xf32> to vector<48x16xf32>
    %54 = arith.addf %52, %53 : vector<48x16xf32>
    %55 = vector.extract_strided_slice %48 {offsets = [48, 0], sizes = [16, 16], strides = [1, 1]} : vector<64x32xf32> to vector<16x16xf32>
    %56 = vector.extract_strided_slice %48 {offsets = [48, 16], sizes = [16, 16], strides = [1, 1]} : vector<64x32xf32> to vector<16x16xf32>
    %57 = arith.mulf %51, %54 : vector<48x16xf32>
    %58 = vector.extract_strided_slice %51 {offsets = [16, 0], sizes = [16, 16], strides = [1, 1]} : vector<48x16xf32> to vector<16x16xf32>
    %59 = arith.mulf %58, %56 : vector<16x16xf32>
    %60 = vector.extract_strided_slice %54 {offsets = [16, 0], sizes = [16, 16], strides = [1, 1]} : vector<48x16xf32> to vector<16x16xf32>
    %61 = arith.mulf %60, %55 : vector<16x16xf32>
    %62 = arith.addf %59, %61 : vector<16x16xf32>
    %c0_20 = arith.constant 0 : index
    %c0_21 = arith.constant 0 : index
    %63 = vector.load %arg5[%c0_20, %c0_21] : memref<64x16xf32, #tpu.memory_space<vmem>>, vector<48x16xf32>
    tpu.vector_store %arg5[%c0_20, %c0_21], %57 {strides = array<i32>} : memref<64x16xf32, #tpu.memory_space<vmem>>, vector<48x16xf32>,
    %c48_22 = arith.constant 48 : index
    %c0_23 = arith.constant 0 : index
    %64 = vector.load %arg5[%c48_22, %c0_23] : memref<64x16xf32, #tpu.memory_space<vmem>>, vector<16x16xf32>
    tpu.vector_store %arg5[%c48_22, %c0_23], %62 {strides = array<i32>} : memref<64x16xf32, #tpu.memory_space<vmem>>, vector<16x16xf32>,
    %c0_24 = arith.constant 0 : index
    %c0_25 = arith.constant 0 : index
    %65 = vector.load %arg5[%c0_24, %c0_25] : memref<64x16xf32, #tpu.memory_space<vmem>>, vector<64x16xf32>
    %66 = vector.broadcast %3 : vector<1x16xf32> to vector<64x16xf32>
    %67 = arith.mulf %65, %66 : vector<64x16xf32>
    %cst_26 = arith.constant dense<0.000000e+00> : vector<64xf32>
    %68 = vector.multi_reduction <add>, %67, %cst_26 [1] : vector<64x16xf32> to vector<64xf32>
    %69 = vector.shape_cast %68 : vector<64xf32> to vector<64x1xf32>
    %c0_27 = arith.constant 0 : index
    %c0_28 = arith.constant 0 : index
    %70 = vector.load %arg4[%c0_27, %c0_28] : memref<64x1xf32, #tpu.memory_space<vmem>>, vector<64x1xf32>
    tpu.vector_store %arg4[%c0_27, %c0_28], %69 {strides = array<i32>} : memref<64x1xf32, #tpu.memory_space<vmem>>, vector<64x1xf32>,
    return
  }
  func.func @transform_0(%arg0: i32) -> (i32, i32) {
    %c0_i32 = arith.constant 0 : i32
    %c0_i32_0 = arith.constant 0 : i32
    %c0_i32_1 = arith.constant 0 : i32
    return %c0_i32, %c0_i32_0 : i32, i32
  }
  func.func @transform_1(%arg0: i32) -> (i32, i32, i32) {
    %c0_i32 = arith.constant 0 : i32
    %c0_i32_0 = arith.constant 0 : i32
    %c0_i32_1 = arith.constant 0 : i32
    %c0_i32_2 = arith.constant 0 : i32
    return %c0_i32, %c0_i32_0, %c0_i32_1 : i32, i32, i32
  }
  func.func @transform_2(%arg0: i32) -> (i32, i32) {
    %c0_i32 = arith.constant 0 : i32
    %c0_i32_0 = arith.constant 0 : i32
    %c0_i32_1 = arith.constant 0 : i32
    return %c0_i32, %c0_i32_0 : i32, i32
  }
  func.func @transform_3(%arg0: i32) -> (i32, i32) {
    %c0_i32 = arith.constant 0 : i32
    %c0_i32_0 = arith.constant 0 : i32
    %c0_i32_1 = arith.constant 0 : i32
    return %c0_i32, %c0_i32_0 : i32, i32
  }
}

</mosaic_0001>

<bundles_post_ra>
// kernel: net_forward.1
= control target key start
LH: loop header
LB: loop body
LE: loop exit
PB: predicated region body
PF: predicated region fallthrough
CT: control target
= control target key end

     0   :  { %vm33_vm0 = vcmask 130048   ;;  %s579_s22 = smov 16   ;;  %vm164_vm1 = vcmask 261120   ;;  %vm530_vm2 = vcmask 7168   ;;  %s826_s1 = inlined_call_operand.vmem [shape: f32[3,32,32], index: 1, kind: input, shape index: {}]   ;;  %s827_s0 = inlined_call_operand.vmem [shape: f32[64,16], index: 0, kind: input, shape index: {}]   ;;  %s828_s2 = inlined_call_operand.vmem [shape: f32[4,32], index: 2, kind: input, shape index: {}]   ;;  %s829_s3 = inlined_call_operand.vmem [shape: f32[64,1], index: 3, kind: output, shape index: {}]  }
   0x1   :  { %v23_v0 = vld [vmem:[%s826_s1 + $0x8] sm:$0xff]  ;;  %v22_v1 = vld [vmem:[%s826_s1] sm:$0xff]  ;;  %v16_v3 = vld [vmem:[%s827_s0 + $0x10] sm:$0xff] }
   0x2   :  { %72 = vmatpush.msra.mxu0 %v23_v0  ;;  %v14_v2 = vld [vmem:[%s827_s0] sm:$0xff]  ;;  %567 = vmatpush.msra.mxu3 %v23_v0  ;;  %v21_v4 = vld [vmem:[%s827_s0 + $0x38] sm:$0xff]  ;;  %v20_v5 = vld [vmem:[%s827_s0 + $0x30] sm:$0xff] }
   0x3   :  { %132 = vrot.lane.b32.xlu1 %v14_v2, %s579_s22  ;;  %136 = vrot.lane.b32.xlu2 %v16_v3, %s579_s22  ;;  %v15_v6 = vld [vmem:[%s827_s0 + $0x8] sm:$0xff]  ;;  %v17_v7 = vld [vmem:[%s827_s0 + $0x18] sm:$0xff] }
   0x4   :  { %73 = vmatpush.msra.mxu0 %v22_v1  ;;  %568 = vmatpush.msra.mxu3 %v22_v1  ;;  %v19_v8 = vld [vmem:[%s827_s0 + $0x28] sm:$0xff]  ;;  %v18_v9 = vld [vmem:[%s827_s0 + $0x20] sm:$0xff]  ;;  %v27_v10 = vld [vmem:[%s826_s1 + $0x38] sm:$0xff] }
   0x5   :  { %543 = vmatmul.msk.f32.vlgmr.msra.gmra.mxu0 %vm33_vm0, %v14_v2  ;;  %550 = vmatmul.msk.f32.vlgmr.msra.gmra.mxu3 %vm33_vm0, %v21_v4  ;;  %v26_v11 = vld [vmem:[%s826_s1 + $0x30] sm:$0xff]  ;;  %v25_v12 = vld [vmem:[%s826_s1 + $0x28] sm:$0xff]  ;;  %v24_v13 = vld [vmem:[%s826_s1 + $0x20] sm:$0xff] }
   0x6   :  { %144 = vrot.lane.b32.xlu0 %v20_v5, %s579_s22  ;;  %201 = vmatpush.msra.mxu1 %v27_v10  ;;  %v662_v14 = vld [vmem:[%s828_s2] sm:$0xf]  ;;  %s580_s2 = smov 112  }
   0x7   :  { %569 = vmatpush.msrb.mxu3 %v27_v10  ;;  %v99_v15 = vperm.slane %v662_v14, 0 }
   0x8   :  { %202 = vmatpush.msra.mxu1 %v26_v11 }
   0x9   :  { %570 = vmatpush.msrb.mxu3 %v26_v11 }
   0xa   :  { %203 = vmatpush.msra.mxu1 %v25_v12 }
   0xb   :  { %134 = vrot.lane.b32.xlu1 %v15_v6, %s579_s22  ;;  %138 = vrot.lane.b32.xlu2 %v17_v7, %s579_s22 }
   0xc   :  { %571 = vmatpush.msrb.mxu3 %v25_v12  ;;  %204 = vmatpush.msra.mxu1 %v24_v13 }
   0xd   :  { %544 = vmatmul.msk.f32.gmra.mxu0 %vm33_vm0, %v15_v6 }
   0xe   :  { %146 = vrot.lane.b32.xlu0 %v21_v4, %s579_s22  ;;  %572 = vmatpush.msrb.mxu3 %v24_v13 }
  0x13   :  { %142 = vrot.lane.b32.xlu1 %v19_v8, %s579_s22 }
  0x15   :  { %545 = vmatmul.msk.f32.gmra.mxu0 %vm33_vm0, %v16_v3  ;;  %v230_v3 = vperm.slane %v662_v14, 1 }
  0x16   :  { %140 = vrot.lane.b32.xlu0 %v18_v9, %s579_s22 }
  0x1d   :  { %546 = vmatmul.msk.f32.gmra.mxu0 %vm33_vm0, %v17_v7 }
  0x25   :  { %547 = vmatmul.msk.f32.gmra.mxu0 %vm33_vm0, %v18_v9 }
  0x2d   :  { %548 = vmatmul.msk.f32.gmra.mxu0 %vm33_vm0, %v19_v8 }
  0x35   :  { %549 = vmatmul.msk.f32.gmra.mxu0 %vm33_vm0, %v20_v5 }
  0x5d   :  { %v137_v33 = vpop.permute.xlu2 %136 }
  0x65   :  { %v139_v44 = vpop.permute.xlu2 %138 }
  0x75   :  { %v133_v20 = vpop.permute.xlu1 %132 }
  0x78   :  { %v145_v31 = vpop.permute.xlu0 %144 }
  0x7d   :  { %v135_v27 = vpop.permute.xlu1 %134 }
  0x80   :  { %v147_v42 = vpop.permute.xlu0 %146 }
  0x82   :  { %v75_v16 = vpop.f32.mrf.mxu0 }
  0x83   :  { %v100_v17 = vadd.f32 %v99_v15, %v75_v16 }
  0x85   :  { %v106_v18 = vmul.f32 %v100_v17, %v100_v17  ;;  %v143_v57 = vpop.permute.xlu1 %142 }
  0x87   :  { %116 = vst.msk [vmem:[#allocation2] sm:$0xff] %vm33_vm0, %v106_v18 }
  0x88   :  { %v96_v35 = vpop.f32.mrf.mxu3  ;;  %v141_v50 = vpop.permute.xlu0 %140 }
  0x8a   :  { %v78_v19 = vpop.f32.mrf.mxu0 }
  0x8b   :  { %v101_v21 = vadd.f32 %v99_v15, %v78_v19 }
  0x8d   :  { %v107_v22 = vmul.f32 %v101_v21, %v101_v21 }
  0x8e   :  { %v124_v23 = vld [vmem:[#allocation2] sm:$0xff] }
  0x8f   :  { %117 = vst.msk [vmem:[#allocation2 + $0x8] sm:$0xff] %vm33_vm0, %v107_v22  ;;  %v156_v24 = vsel %vm33_vm0, %v124_v23, %v133_v20 }
  0x90   :  { %551 = vmatmul.msk.f32.vlgmr.msra.gmra.mxu1 %vm164_vm1, %v156_v24 }
  0x92   :  { %v81_v25 = vpop.f32.mrf.mxu0 }
  0x93   :  { %v102_v26 = vadd.f32 %v99_v15, %v81_v25 }
  0x95   :  { %v108_v28 = vmul.f32 %v102_v26, %v102_v26  ;;  %v112_v54 = vmul.f32 2.0, %v102_v26 }
  0x96   :  { %v125_v29 = vld [vmem:[#allocation2 + $0x8] sm:$0xff] }
  0x97   :  { %118 = vst.msk [vmem:[#allocation2 + $0x10] sm:$0xff] %vm33_vm0, %v108_v28  ;;  %v157_v30 = vsel %vm33_vm0, %v125_v29, %v135_v27 }
  0x98   :  { %552 = vmatmul.msk.f32.gmra.mxu1 %vm164_vm1, %v157_v30 }
  0x9a   :  { %v84_v32 = vpop.f32.mrf.mxu0 }
  0x9b   :  { %v103_v34 = vadd.f32 %v99_v15, %v84_v32 }
  0x9d   :  { %v109_v36 = vmul.f32 %v103_v34, %v103_v34  ;;  %v113_v37 = vmul.f32 2.0, %v103_v34 }
  0x9e   :  { %v126_v38 = vld [vmem:[#allocation2 + $0x10] sm:$0xff] }
  0x9f   :  { %119 = vst.msk [vmem:[#allocation2 + $0x18] sm:$0xff] %vm33_vm0, %v109_v36  ;;  %v115_v39 = vmul.f32 %v113_v37, %v96_v35  ;;  %v158_v40 = vsel %vm33_vm0, %v126_v38, %v137_v33 }
  0xa0   :  { %553 = vmatmul.msk.f32.gmra.mxu1 %vm164_vm1, %v158_v40  ;;  %v31_v40 = vld [vmem:[%s826_s1 + $0x58] sm:$0xff] }
  0xa1   :  { %123 = vst.msk [vmem:[#allocation2 + $0x38] sm:$0xff] %vm33_vm0, %v115_v39  ;;  %387 = vmatpush.msra.mxu2 %v31_v40  ;;  %573 = vmatpush.msra.mxu3 %v31_v40 }
  0xa2   :  { %v87_v41 = vpop.f32.mrf.mxu0 }
  0xa3   :  { %v104_v43 = vadd.f32 %v99_v15, %v87_v41  ;;  %v30_v41 = vld [vmem:[%s826_s1 + $0x50] sm:$0xff] }
  0xa4   :  { %388 = vmatpush.msra.mxu2 %v30_v41  ;;  %574 = vmatpush.msra.mxu3 %v30_v41 }
  0xa5   :  { %v110_v45 = vmul.f32 %v104_v43, %v104_v43 }
  0xa6   :  { %v127_v46 = vld [vmem:[#allocation2 + $0x18] sm:$0xff] }
  0xa7   :  { %120 = vst.msk [vmem:[#allocation2 + $0x20] sm:$0xff] %vm33_vm0, %v110_v45  ;;  %v159_v47 = vsel %vm33_vm0, %v127_v46, %v139_v44  ;;  %v28_v46 = vld [vmem:[%s826_s1 + $0x40] sm:$0xff] }
  0xa8   :  { %554 = vmatmul.msk.f32.gmra.mxu1 %vm164_vm1, %v159_v47  ;;  %v131_v62 = vld [vmem:[#allocation2 + $0x38] sm:$0xff] }
  0xa9   :  { %v163_v63 = vsel %vm33_vm0, %v131_v62, %v147_v42  ;;  %v29_v42 = vld [vmem:[%s826_s1 + $0x48] sm:$0xff] }
  0xaa   :  { %v90_v48 = vpop.f32.mrf.mxu0  ;;  %389 = vmatpush.msra.mxu2 %v29_v42  ;;  %575 = vmatpush.msra.mxu3 %v29_v42 }
  0xab   :  { %v105_v49 = vadd.f32 %v99_v15, %v90_v48 }
  0xac   :  { %390 = vmatpush.msra.mxu2 %v28_v46  ;;  %576 = vmatpush.msra.mxu3 %v28_v46 }
  0xad   :  { %v111_v51 = vmul.f32 %v105_v49, %v105_v49 }
  0xae   :  { %v128_v52 = vld [vmem:[#allocation2 + $0x20] sm:$0xff] }
  0xaf   :  { %121 = vst.msk [vmem:[#allocation2 + $0x28] sm:$0xff] %vm33_vm0, %v111_v51  ;;  %v160_v53 = vsel %vm33_vm0, %v128_v52, %v141_v50 }
  0xb0   :  { %555 = vmatmul.msk.f32.gmra.mxu1 %vm164_vm1, %v160_v53 }
  0xb2   :  { %v93_v55 = vpop.f32.mrf.mxu0 }
  0xb3   :  { %v114_v56 = vmul.f32 %v112_v54, %v93_v55 }
  0xb5   :  { %122 = vst.msk [vmem:[#allocation2 + $0x30] sm:$0xff] %vm33_vm0, %v114_v56 }
  0xb6   :  { %v129_v58 = vld [vmem:[#allocation2 + $0x28] sm:$0xff] }
  0xb7   :  { %v161_v59 = vsel %vm33_vm0, %v129_v58, %v143_v57 }
  0xb8   :  { %556 = vmatmul.msk.f32.gmra.mxu1 %vm164_vm1, %v161_v59 }
  0xbc   :  { %v130_v60 = vld [vmem:[#allocation2 + $0x30] sm:$0xff] }
  0xbd   :  { %v162_v61 = vsel %vm33_vm0, %v130_v60, %v145_v31 }
  0xbe   :  { %557 = vmatmul.msk.f32.vlgmr.msrb.gmra.mxu3 %vm164_vm1, %v162_v61 }
  0xc6   :  { %558 = vmatmul.msk.f32.gmra.mxu3 %vm164_vm1, %v163_v63 }
 0x10d   :  { %v206_v0 = vpop.f32.mrf.mxu1 }
 0x10e   :  { %v231_v7 = vadd.f32 %v230_v3, %v206_v0 }
 0x115   :  { %v209_v1 = vpop.f32.mrf.mxu1 }
 0x116   :  { %v232_v12 = vadd.f32 %v230_v3, %v209_v1 }
 0x11d   :  { %v212_v2 = vpop.f32.mrf.mxu1 }
 0x11e   :  { %v233_v10 = vadd.f32 %v230_v3, %v212_v2 }
 0x125   :  { %v215_v4 = vpop.f32.mrf.mxu1 }
 0x126   :  { %v690_v5 = vadd.f32 %v230_v3, %v215_v4 }
 0x12d   :  { %v218_v9 = vpop.f32.mrf.mxu1 }
 0x12e   :  { %v235_v15 = vadd.f32 %v230_v3, %v218_v9 }
 0x135   :  { %v221_v11 = vpop.f32.mrf.mxu1 }
 0x136   :  { %v236_v13 = vadd.f32 %v230_v3, %v221_v11 }
 0x141   :  { %v224_v6 = vpop.f32.mrf.mxu3 }
 0x142   :  { %269 = vrot.lane.b32.xlu1 %v224_v6, %s580_s2  ;;  %277 = vrot.lane.b32.xlu2 %v224_v6, %s579_s22  ;;  %v416_v6 = vperm.slane %v662_v14, 2 }
 0x149   :  { %v227_v8 = vpop.f32.mrf.mxu3 }
 0x14a   :  { %243 = vrot.lane.b32.xlu1 %v231_v7, %s580_s2  ;;  %279 = vrot.lane.b32.xlu0 %v227_v8, %s579_s22 }
 0x152   :  { %247 = vrot.lane.b32.xlu1 %v233_v10, %s580_s2  ;;  %271 = vrot.lane.b32.xlu0 %v227_v8, %s580_s2 }
 0x15a   :  { %253 = vrot.lane.b32.xlu1 %v236_v13, %s580_s2  ;;  %245 = vrot.lane.b32.xlu0 %v232_v12, %s580_s2 }
 0x162   :  { %251 = vrot.lane.b32.xlu0 %v235_v15, %s580_s2 }
 0x19c   :  { %v278_v16 = vpop.permute.xlu2 %277 }
 0x19d   :  { %v283_v17 = vmul.f32 %v278_v16, %v233_v10 }
 0x19f   :  { %287 = vrot.lane.b32.xlu2 %v283_v17, %s580_s2 }
 0x1b4   :  { %v270_v18 = vpop.permute.xlu1 %269 }
 0x1b5   :  { %v275_v35 = vmul.f32 %v270_v18, %v233_v10 }
 0x1bc   :  { %v244_v19 = vpop.permute.xlu1 %243  ;;  %v280_v20 = vpop.permute.xlu0 %279 }
 0x1bd   :  { %v261_v21 = vmul.f32 %v244_v19, %v231_v7  ;;  %v284_v22 = vmul.f32 %v280_v20, %v690_v5 }
 0x1bf   :  { %295 = vst.msk [vmem:[#allocation2] sm:$0xff] %vm33_vm0, %v261_v21  ;;  %289 = vrot.lane.b32.xlu2 %v284_v22, %s580_s2 }
 0x1c4   :  { %v248_v23 = vpop.permute.xlu1 %247  ;;  %v272_v24 = vpop.permute.xlu0 %271 }
 0x1c5   :  { %v263_v25 = vmul.f32 %v248_v23, %v233_v10  ;;  %v276_v44 = vmul.f32 %v272_v24, %v690_v5 }
 0x1c6   :  { %v303_v26 = vld [vmem:[#allocation2] sm:$0xff] }
 0x1c7   :  { %297 = vst.msk [vmem:[#allocation2 + $0x10] sm:$0xff] %vm33_vm0, %v263_v25  ;;  %319 = vrot.lane.b32.xlu0 %v303_v26, %s579_s22  ;;  %249 = vrot.lane.b32.xlu2 %v690_v5, %s580_s2 }
 0x1cc   :  { %v254_v27 = vpop.permute.xlu1 %253  ;;  %v246_v28 = vpop.permute.xlu0 %245 }
 0x1cd   :  { %v266_v29 = vmul.f32 %v254_v27, %v236_v13  ;;  %v262_v30 = vmul.f32 %v246_v28, %v232_v12 }
 0x1ce   :  { %v305_v31 = vld [vmem:[#allocation2 + $0x10] sm:$0xff] }
 0x1cf   :  { %300 = vst.msk [vmem:[#allocation2 + $0x28] sm:$0xff] %vm33_vm0, %v266_v29  ;;  %323 = vrot.lane.b32.xlu0 %v305_v31, %s579_s22  ;;  %v497_v29 = vperm.slane %v662_v14, 3 }
 0x1d0   :  { %296 = vst.msk [vmem:[#allocation2 + $0x8] sm:$0xff] %vm33_vm0, %v262_v30 }
 0x1d4   :  { %v252_v32 = vpop.permute.xlu0 %251 }
 0x1d5   :  { %v265_v33 = vmul.f32 %v252_v32, %v235_v15 }
 0x1d6   :  { %v308_v34 = vld [vmem:[#allocation2 + $0x28] sm:$0xff] }
 0x1d7   :  { %299 = vst.msk [vmem:[#allocation2 + $0x20] sm:$0xff] %vm33_vm0, %v265_v33  ;;  %329 = vrot.lane.b32.xlu0 %v308_v34, %s579_s22  ;;  %v304_v39 = vld [vmem:[#allocation2 + $0x8] sm:$0xff] }
 0x1de   :  { %v307_v43 = vld [vmem:[#allocation2 + $0x20] sm:$0xff] }
 0x1f9   :  { %v288_v36 = vpop.permute.xlu2 %287 }
 0x1fa   :  { %v293_v37 = vadd.f32 %v288_v36, %v275_v35 }
 0x1fc   :  { %301 = vst.msk [vmem:[#allocation2 + $0x30] sm:$0xff] %vm33_vm0, %v293_v37 }
 0x203   :  { %v309_v38 = vld [vmem:[#allocation2 + $0x30] sm:$0xff] }
 0x204   :  { %331 = vrot.lane.b32.xlu2 %v309_v38, %s579_s22 }
 0x20c   :  { %321 = vrot.lane.b32.xlu2 %v304_v39, %s579_s22 }
 0x214   :  { %327 = vrot.lane.b32.xlu2 %v307_v43, %s579_s22 }
 0x219   :  { %v290_v45 = vpop.permute.xlu2 %289 }
 0x21a   :  { %v294_v47 = vadd.f32 %v290_v45, %v276_v44 }
 0x21c   :  { %302 = vst.msk [vmem:[#allocation2 + $0x38] sm:$0xff] %vm33_vm0, %v294_v47 }
 0x221   :  { %v250_v48 = vpop.permute.xlu2 %249 }
 0x222   :  { %v264_v49 = vmul.f32 %v250_v48, %v690_v5 }
 0x223   :  { %v310_v50 = vld [vmem:[#allocation2 + $0x38] sm:$0xff] }
 0x224   :  { %298 = vst.msk [vmem:[#allocation2 + $0x18] sm:$0xff] %vm33_vm0, %v264_v49  ;;  %333 = vrot.lane.b32.xlu1 %v310_v50, %s579_s22 }
 0x22b   :  { %v306_v51 = vld [vmem:[#allocation2 + $0x18] sm:$0xff] }
 0x22c   :  { %325 = vrot.lane.b32.xlu1 %v306_v51, %s579_s22 }
 0x239   :  { %v320_v52 = vpop.permute.xlu0 %319 }
 0x23a   :  { %v343_v53 = vsel %vm33_vm0, %v303_v26, %v320_v52 }
 0x23b   :  { %559 = vmatmul.msk.f32.vlgmr.msra.gmra.mxu2 %vm164_vm1, %v343_v53 }
 0x241   :  { %v324_v58 = vpop.permute.xlu0 %323 }
 0x242   :  { %v345_v59 = vsel %vm33_vm0, %v305_v31, %v324_v58 }
 0x249   :  { %v330_v2 = vpop.permute.xlu0 %329 }
 0x24a   :  { %v348_v3 = vsel %vm33_vm0, %v308_v34, %v330_v2 }
 0x25e   :  { %v332_v54 = vpop.permute.xlu2 %331 }
 0x25f   :  { %v349_v55 = vsel %vm33_vm0, %v309_v38, %v332_v54 }
 0x260   :  { %565 = vmatmul.msk.f32.vlgmr.msra.gmra.mxu3 %vm164_vm1, %v349_v55 }
 0x266   :  { %v322_v56 = vpop.permute.xlu2 %321 }
 0x267   :  { %v344_v57 = vsel %vm33_vm0, %v304_v39, %v322_v56 }
 0x268   :  { %560 = vmatmul.msk.f32.gmra.mxu2 %vm164_vm1, %v344_v57 }
 0x26e   :  { %v328_v0 = vpop.permute.xlu2 %327 }
 0x26f   :  { %v347_v1 = vsel %vm33_vm0, %v307_v43, %v328_v0 }
 0x270   :  { %561 = vmatmul.msk.f32.gmra.mxu2 %vm164_vm1, %v345_v59 }
 0x296   :  { %v334_v60 = vpop.permute.xlu1 %333 }
 0x297   :  { %v350_v61 = vsel %vm33_vm0, %v310_v50, %v334_v60 }
 0x298   :  { %566 = vmatmul.msk.f32.gmra.mxu3 %vm164_vm1, %v350_v61 }
 0x29e   :  { %v326_v62 = vpop.permute.xlu1 %325 }
 0x29f   :  { %v346_v63 = vsel %vm33_vm0, %v306_v51, %v326_v62 }
 0x2a0   :  { %562 = vmatmul.msk.f32.gmra.mxu2 %vm164_vm1, %v346_v63 }
 0x2a8   :  { %563 = vmatmul.msk.f32.gmra.mxu2 %vm164_vm1, %v347_v1 }
 0x2b0   :  { %564 = vmatmul.msk.f32.gmra.mxu2 %vm164_vm1, %v348_v3 }
 0x2be   :  { %v392_v4 = vpop.f32.mrf.mxu2 }
 0x2bf   :  { %v417_v12 = vadd.f32 %v416_v6, %v392_v4 }
 0x2e3   :  { %v410_v5 = vpop.f32.mrf.mxu3 }
 0x2e4   :  { %455 = vrot.lane.b32.xlu0 %v410_v5, %s580_s2  ;;  %463 = vrot.lane.b32.xlu1 %v410_v5, %s579_s22 }
 0x2eb   :  { %v395_v7 = vpop.f32.mrf.mxu2 }
 0x2ec   :  { %v418_v8 = vadd.f32 %v416_v6, %v395_v7 }
 0x2ee   :  { %431 = vrot.lane.b32.xlu0 %v418_v8, %s580_s2 }
 0x2f3   :  { %v398_v9 = vpop.f32.mrf.mxu2 }
 0x2f4   :  { %v756_v10 = vadd.f32 %v416_v6, %v398_v9 }
 0x2f6   :  { %433 = vrot.lane.b32.xlu1 %v756_v10, %s580_s2 }
 0x31b   :  { %v413_v11 = vpop.f32.mrf.mxu3 }
 0x31c   :  { %465 = vrot.lane.b32.xlu2 %v413_v11, %s579_s22  ;;  %457 = vrot.lane.b32.xlu1 %v413_v11, %s580_s2 }
 0x323   :  { %v401_v13 = vpop.f32.mrf.mxu2 }
 0x324   :  { %429 = vrot.lane.b32.xlu2 %v417_v12, %s580_s2  ;;  %v763_v15 = vadd.f32 %v416_v6, %v401_v13 }
 0x32b   :  { %v404_v16 = vpop.f32.mrf.mxu2 }
 0x32c   :  { %v421_v17 = vadd.f32 %v416_v6, %v404_v16  ;;  %435 = vrot.lane.b32.xlu2 %v763_v15, %s580_s2 }
 0x32e   :  { %437 = vrot.lane.b32.xlu0 %v421_v17, %s580_s2 }
 0x333   :  { %v407_v18 = vpop.f32.mrf.mxu2 }
 0x334   :  { %v422_v19 = vadd.f32 %v416_v6, %v407_v18 }
 0x336   :  { %439 = vrot.lane.b32.xlu1 %v422_v19, %s580_s2 }
 0x356   :  { %v464_v20 = vpop.permute.xlu1 %463  ;;  %v456_v22 = vpop.permute.xlu0 %455 }
 0x357   :  { %v469_v21 = vmul.f32 %v464_v20, %v756_v10  ;;  %v461_v53 = vmul.f32 %v456_v22, %v756_v10 }
 0x359   :  { %473 = vrot.lane.b32.xlu2 %v469_v21, %s580_s2 }
 0x360   :  { %v432_v23 = vpop.permute.xlu0 %431 }
 0x361   :  { %v448_v24 = vmul.f32 %v432_v23, %v418_v8 }
 0x363   :  { %482 = vst.msk [vmem:[#allocation2 + $0x8] sm:$0xff] %vm33_vm0, %v448_v24 }
 0x368   :  { %v434_v25 = vpop.permute.xlu1 %433 }
 0x369   :  { %v449_v26 = vmul.f32 %v434_v25, %v756_v10 }
 0x36a   :  { %v490_v30 = vld [vmem:[#allocation2 + $0x8] sm:$0xff] }
 0x36b   :  { %483 = vst.msk [vmem:[#allocation2 + $0x10] sm:$0xff] %vm33_vm0, %v449_v26  ;;  %v499_v31 = vmul.f32 %v497_v29, %v490_v30 }
 0x36d   :  { %v509_v34 = vsel %vm33_vm0, %v499_v31, 0.0 }
 0x372   :  { %v491_v42 = vld [vmem:[#allocation2 + $0x10] sm:$0xff] }
 0x373   :  { %v500_v43 = vmul.f32 %v497_v29, %v491_v42 }
 0x375   :  { %v512_v47 = vsel %vm33_vm0, %v500_v43, 0.0 }
 0x376   :  { %v466_v27 = vpop.permute.xlu2 %465 }
 0x377   :  { %v470_v28 = vmul.f32 %v466_v27, %v763_v15 }
 0x379   :  { %475 = vrot.lane.b32.xlu0 %v470_v28, %s580_s2 }
 0x37e   :  { %v430_v32 = vpop.permute.xlu2 %429 }
 0x37f   :  { %v447_v33 = vmul.f32 %v430_v32, %v417_v12 }
 0x381   :  { %481 = vst.msk [vmem:[#allocation2] sm:$0xff] %vm33_vm0, %v447_v33 }
 0x382   :  { %510 = vadd.xlane.f32.xlu2 %v509_v34 }
 0x386   :  { %v436_v35 = vpop.permute.xlu2 %435 }
 0x387   :  { %v450_v36 = vmul.f32 %v436_v35, %v763_v15 }
 0x388   :  { %v489_v37 = vld [vmem:[#allocation2] sm:$0xff] }
 0x389   :  { %484 = vst.msk [vmem:[#allocation2 + $0x18] sm:$0xff] %vm33_vm0, %v450_v36  ;;  %v498_v38 = vmul.f32 %v497_v29, %v489_v37 }
 0x38b   :  { %v506_v14 = vsel %vm33_vm0, %v498_v38, 0.0 }
 0x38c   :  { %507 = vadd.xlane.f32.xlu1 %v506_v14 }
 0x38e   :  { %v458_v44 = vpop.permute.xlu1 %457 }
 0x38f   :  { %v462_v62 = vmul.f32 %v458_v44, %v763_v15 }
 0x390   :  { %v492_v39 = vld [vmem:[#allocation2 + $0x18] sm:$0xff] }
 0x391   :  { %v501_v40 = vmul.f32 %v497_v29, %v492_v39 }
 0x393   :  { %v515_v41 = vsel %vm33_vm0, %v501_v40, 0.0 }
 0x394   :  { %516 = vadd.xlane.f32.xlu2 %v515_v41 }
 0x3a0   :  { %v438_v45 = vpop.permute.xlu0 %437 }
 0x3a1   :  { %v451_v46 = vmul.f32 %v438_v45, %v421_v17 }
 0x3a3   :  { %485 = vst.msk [vmem:[#allocation2 + $0x20] sm:$0xff] %vm33_vm0, %v451_v46  ;;  %513 = vadd.xlane.f32.xlu0 %v512_v47 }
 0x3a8   :  { %v440_v48 = vpop.permute.xlu1 %439 }
 0x3a9   :  { %v452_v49 = vmul.f32 %v440_v48, %v422_v19 }
 0x3aa   :  { %v493_v50 = vld [vmem:[#allocation2 + $0x20] sm:$0xff] }
 0x3ab   :  { %486 = vst.msk [vmem:[#allocation2 + $0x28] sm:$0xff] %vm33_vm0, %v452_v49  ;;  %v502_v51 = vmul.f32 %v497_v29, %v493_v50 }
 0x3ad   :  { %v518_v52 = vsel %vm33_vm0, %v502_v51, 0.0 }
 0x3ae   :  { %519 = vadd.xlane.f32.xlu1 %v518_v52 }
 0x3b2   :  { %v494_v54 = vld [vmem:[#allocation2 + $0x28] sm:$0xff] }
 0x3b3   :  { %v474_v55 = vpop.permute.xlu2 %473  ;;  %v503_v56 = vmul.f32 %v497_v29, %v494_v54 }
 0x3b4   :  { %v479_v57 = vadd.f32 %v474_v55, %v461_v53 }
 0x3b5   :  { %v521_v58 = vsel %vm33_vm0, %v503_v56, 0.0 }
 0x3b6   :  { %487 = vst.msk [vmem:[#allocation2 + $0x30] sm:$0xff] %vm33_vm0, %v479_v57  ;;  %522 = vadd.xlane.f32.xlu2 %v521_v58 }
 0x3bd   :  { %v495_v59 = vld [vmem:[#allocation2 + $0x30] sm:$0xff] }
 0x3be   :  { %v504_v60 = vmul.f32 %v497_v29, %v495_v59 }
 0x3c0   :  { %v524_v61 = vsel %vm33_vm0, %v504_v60, 0.0 }
 0x3c1   :  { %525 = vadd.xlane.f32.xlu0 %v524_v61 }
 0x3eb   :  { %v476_v63 = vpop.permute.xlu0 %475 }
 0x3ec   :  { %v480_v0 = vadd.f32 %v476_v63, %v462_v62 }
 0x3ee   :  { %488 = vst.msk [vmem:[#allocation2 + $0x38] sm:$0xff] %vm33_vm0, %v480_v0 }
 0x3f5   :  { %v511_v1 = vpop.xlane.xlu2 %510  ;;  %v496_v2 = vld [vmem:[#allocation2 + $0x38] sm:$0xff] }
 0x3f6   :  { %532 = vst.msk [vmem:[%s829_s3 + $0x8] sm:$0xff] %vm530_vm2, %v511_v1  ;;  %v505_v3 = vmul.f32 %v497_v29, %v496_v2 }
 0x3f8   :  { %v527_v4 = vsel %vm33_vm0, %v505_v3, 0.0 }
 0x3f9   :  { %528 = vadd.xlane.f32.xlu1 %v527_v4 }
 0x3ff   :  { %v508_v5 = vpop.xlane.xlu1 %507 }
 0x400   :  { %531 = vst.msk [vmem:[%s829_s3] sm:$0xff] %vm530_vm2, %v508_v5 }
 0x407   :  { %v517_v6 = vpop.xlane.xlu2 %516 }
 0x408   :  { %534 = vst.msk [vmem:[%s829_s3 + $0x18] sm:$0xff] %vm530_vm2, %v517_v6 }
 0x416   :  { %v514_v7 = vpop.xlane.xlu0 %513 }
 0x417   :  { %533 = vst.msk [vmem:[%s829_s3 + $0x10] sm:$0xff] %vm530_vm2, %v514_v7 }
 0x421   :  { %v520_v8 = vpop.xlane.xlu1 %519 }
 0x422   :  { %535 = vst.msk [vmem:[%s829_s3 + $0x20] sm:$0xff] %vm530_vm2, %v520_v8 }
 0x429   :  { %v523_v9 = vpop.xlane.xlu2 %522 }
 0x42a   :  { %536 = vst.msk [vmem:[%s829_s3 + $0x28] sm:$0xff] %vm530_vm2, %v523_v9 }
 0x434   :  { %v526_v10 = vpop.xlane.xlu0 %525 }
 0x435   :  { %537 = vst.msk [vmem:[%s829_s3 + $0x30] sm:$0xff] %vm530_vm2, %v526_v10 }
 0x46c   :  { %v529_v11 = vpop.xlane.xlu1 %528 }
 0x46d   :  { %538 = vst.msk [vmem:[%s829_s3 + $0x38] sm:$0xff] %vm530_vm2, %v529_v11 }

</bundles_post_ra>
